<compile_context>
chip_gen: v5e
topology: v5e:2x2
jax: 0.10.0
libtpu: 0.0.40
codegen_flags: <defaults>
</compile_context>

<pallas_src>
import functools

import jax
import jax.numpy as jnp
from jax.experimental import pallas as pl
from jax.experimental.pallas import tpu as pltpu


def actor_kernel(x_ref, w1_ref, b1_ref, w2_ref, b2_ref, o_ref):
    # x: (TB, nS) f32 -> cast to bf16 in-kernel (single HBM pass over x).
    x = x_ref[...].astype(jnp.bfloat16)
    h = jnp.dot(x, w1_ref[...], preferred_element_type=jnp.float32)   # (TB, H) f32 acc
    h = jnp.tanh(h + b1_ref[...])                                     # f32 VPU/EUP (v5e-safe)

    # Second matmul emitted transposed so the batch axis sits on the 128-lane axis
    # of the output store:  logits_t[o, b] = sum_k w2[k, o] * h[b, k].
    # h stays f32 (layer-2 MXU work is ~nothing; avoids a (TB,50) pack pass).
    # TODO(synk): verify via pl.lower_as_mlir that no vxpose of h is inserted; if it
    # is, emit h @ w2 and transpose only the tiny (TB,4) result before the store.
    logits_t = jax.lax.dot_general(
        w2_ref[...], h,
        dimension_numbers=(((0,), (1,)), ((), ())),
        preferred_element_type=jnp.float32,
    )                                                                  # (O, TB) f32
    logits_t = logits_t + b2_ref[...]                                  # b2: (O, 1) broadcasts over lanes

    # Numerically-stable log_softmax over the class axis (axis 0 here), in f32.
    m = jnp.max(logits_t, axis=0, keepdims=True)
    shifted = logits_t - m
    lse = jnp.log(jnp.sum(jnp.exp(shifted), axis=0, keepdims=True))
    o_ref[...] = (shifted - lse).astype(o_ref.dtype)                   # lane-dense (O, TB) store


def _num_tensorcores():
    """2 TensorCores per chip on v7x, 1 on v5e/v6e. Conservative fallback: 1."""
    try:
        kind = jax.devices()[0].device_kind.lower()
    except Exception:
        return 1
    return 2 if "v7" in kind else 1


def _choose_tb(B):
    """Pick the batch tile. VMEM is never the constraint here (even tb=8192 is ~1-2 MiB)."""
    b_align = pl.cdiv(B, 128) * 128          # tb must be a multiple of 128 (lane axis of output)
    if _num_tensorcores() >= 2 and b_align >= 256:
        # Keep >=2 tiles so the "parallel" batch axis is sharded across both TCs.
        tb = min(max(b_align // 2, 128), 1024)
    else:
        # Single TC: one big tile for small/moderate B, ~1024 for large B.
        tb = min(b_align, 1024)
    return max(128, (tb // 128) * 128)


@functools.partial(jax.jit, static_argnames=("tb",))
def actor_forward(x, w1, b1, w2, b2, *, tb=None):
    """x: (B, nS) f32; w1: (nS, H); b1: (1, H); w2: (H, O); b2: (1, O). Returns (B, O) f32."""
    B, nS = x.shape
    H = w1.shape[1]   # 50
    O = w2.shape[1]   # 4

    if tb is None:
        tb = _choose_tb(B)
    n_tiles = pl.cdiv(B, tb)
    B_pad = n_tiles * tb

    # Pad only the ragged tail; no extra HBM pass when B is already aligned.
    # Padded rows become bias-only log-softmax (finite) and are sliced off below.
    x_in = x if B_pad == B else jnp.pad(x, ((0, B_pad - B), (0, 0)))

    w1b = w1.astype(jnp.bfloat16)                  # bf16 MXU path for the big matmul
    b1f = b1.astype(jnp.float32)
    w2f = w2.astype(jnp.float32)                   # tiny; keep f32 (no pack pass, full precision)
    b2c = b2.reshape(O, 1).astype(jnp.float32)     # column -> broadcasts along lane (batch) axis

    cost = pl.CostEstimate(
        flops=2 * B_pad * (nS * H + H * O),
        transcendentals=B_pad * (H + O + 1),       # tanh + exp + log
        bytes_accessed=(B_pad * nS * 4             # x read (f32)
                        + O * B_pad * 4            # output write (f32)
                        + nS * H * 2 + H * 4 + H * O * 4 + O * 4),  # params
    )

    out_t = pl.pallas_call(
        actor_kernel,
        out_shape=jax.ShapeDtypeStruct((O, B_pad), jnp.float32),
        grid=(n_tiles,),
        in_specs=[
            pl.BlockSpec((tb, nS), lambda i: (i, 0)),      # x tile walks the batch
            pl.BlockSpec((nS, H), lambda i: (0, 0)),       # weights resident across grid
            pl.BlockSpec((1, H), lambda i: (0, 0)),
            pl.BlockSpec((H, O), lambda i: (0, 0)),
            pl.BlockSpec((O, 1), lambda i: (0, 0)),
        ],
        out_specs=pl.BlockSpec((O, tb), lambda i: (0, i)),  # lane-dense transposed output
        compiler_params=pltpu.CompilerParams(
            dimension_semantics=("parallel",),              # shard batch tiles across TCs on v7x
        ),
        cost_estimate=cost,
    )(x_in, w1b, b1f, w2f, b2c)

    return out_t.T[:B]                                      # (B, O); fuses under the jit


if __name__ == "__main__":
    # Small but non-trivial batch so padding / tiling logic is exercised
    # (200 -> pad 256; 1 tile on v5e/v6e, 2 tiles on v7x).
    B, nS, H, O = 200, 32, 50, 4

    key = jax.random.PRNGKey(0)
    kx, kw1, kb1, kw2, kb2 = jax.random.split(key, 5)

    # Deterministic parameter init (uniform, same scale rule as nn.Linear).
    x = jax.random.normal(kx, (B, nS), dtype=jnp.float32)
    lim1 = 1.0 / jnp.sqrt(jnp.float32(nS))
    w1 = jax.random.uniform(kw1, (nS, H), minval=-lim1, maxval=lim1, dtype=jnp.float32)
    b1 = jax.random.uniform(kb1, (1, H), minval=-lim1, maxval=lim1, dtype=jnp.float32)
    lim2 = 1.0 / jnp.sqrt(jnp.float32(H))
    w2 = jax.random.uniform(kw2, (H, O), minval=-lim2, maxval=lim2, dtype=jnp.float32)
    b2 = jax.random.uniform(kb2, (1, O), minval=-lim2, maxval=lim2, dtype=jnp.float32)

    out = actor_forward(x, w1, b1, w2, b2)
    out = jax.block_until_ready(out)
    assert out.shape == (B, O)

    # Reference 1: same math path (bf16 x/w1 on the MXU, f32 accumulate, f32 layer 2).
    h_ref = jnp.tanh(
        jnp.dot(x.astype(jnp.bfloat16), w1.astype(jnp.bfloat16),
                preferred_element_type=jnp.float32) + b1)
    logits_ref = h_ref @ w2 + b2
    ref_matched = jax.nn.log_softmax(logits_ref, axis=-1)
    assert jnp.allclose(out, ref_matched, atol=2e-3, rtol=2e-3)

    # Reference 2: pure-f32 PyTorch-equivalent math (loose tolerance for bf16 layer-1 inputs).
    ref_f32 = jax.nn.log_softmax(jnp.tanh(x @ w1 + b1) @ w2 + b2, axis=-1)
    assert jnp.allclose(out, ref_f32, atol=5e-2, rtol=5e-2)

    # log-probs should normalize: exp(logp) sums to 1 per row.
    assert jnp.allclose(jnp.sum(jnp.exp(out), axis=-1), 1.0, atol=1e-3)

    print("KERNEL_OK")
</pallas_src>

<mosaic_0001>
module attributes {stable_mosaic.version = 11 : i64} {
  func.func @actor_kernel(%arg0: i32, %arg1: memref<256x32xf32, #tpu.memory_space<vmem>>, %arg2: memref<32x50xbf16, #tpu.memory_space<vmem>>, %arg3: memref<1x50xf32, #tpu.memory_space<vmem>>, %arg4: memref<50x4xf32, #tpu.memory_space<vmem>>, %arg5: memref<4x1xf32, #tpu.memory_space<vmem>>, %arg6: memref<4x256xf32, #tpu.memory_space<vmem>>) attributes {dimension_semantics = [#tpu.dimension_semantics<parallel>], iteration_bounds = array<i64: 1>, scalar_prefetch = 0 : i64, scratch_operands = 0 : i64, tpu.core_type = #tpu.core_type<tc>, window_params = [{transform_indices = @transform_0, window_bounds = array<i64: 256, 32>}, {pipeline_mode = #tpu.pipeline_mode<synchronous>, transform_indices = @transform_1, window_bounds = array<i64: 32, 50>}, {pipeline_mode = #tpu.pipeline_mode<synchronous>, transform_indices = @transform_2, window_bounds = array<i64: 1, 50>}, {pipeline_mode = #tpu.pipeline_mode<synchronous>, transform_indices = @transform_3, window_bounds = array<i64: 50, 4>}, {pipeline_mode = #tpu.pipeline_mode<synchronous>, transform_indices = @transform_4, window_bounds = array<i64: 4, 1>}, {transform_indices = @transform_5, window_bounds = array<i64: 4, 256>}]} {
    %c0 = arith.constant 0 : index
    %c0_0 = arith.constant 0 : index
    %0 = vector.load %arg1[%c0, %c0_0] : memref<256x32xf32, #tpu.memory_space<vmem>>, vector<256x32xf32>
    %1 = arith.truncf %0 : vector<256x32xf32> to vector<256x32xbf16>
    %c0_1 = arith.constant 0 : index
    %c0_2 = arith.constant 0 : index
    %2 = vector.load %arg2[%c0_1, %c0_2] : memref<32x50xbf16, #tpu.memory_space<vmem>>, vector<32x50xbf16>
    %cst = arith.constant dense<0.000000e+00> : vector<256x50xf32>
    %3 = tpu.matmul %1, %2, %cst {dimension_numbers = #tpu.dot_dimension_numbers<[1], [0], [0], [1], [0, 0, 1, 1], [], []>} : vector<256x32xbf16>, vector<32x50xbf16>, vector<256x50xf32> -> vector<256x50xf32>
    %c0_3 = arith.constant 0 : index
    %c0_4 = arith.constant 0 : index
    %4 = vector.load %arg3[%c0_3, %c0_4] : memref<1x50xf32, #tpu.memory_space<vmem>>, vector<1x50xf32>
    %5 = vector.broadcast %4 : vector<1x50xf32> to vector<256x50xf32>
    %6 = arith.addf %3, %5 : vector<256x50xf32>
    %7 = math.tanh %6 : vector<256x50xf32>
    %c0_5 = arith.constant 0 : index
    %c0_6 = arith.constant 0 : index
    %8 = vector.load %arg4[%c0_5, %c0_6] : memref<50x4xf32, #tpu.memory_space<vmem>>, vector<50x4xf32>
    %cst_7 = arith.constant dense<0.000000e+00> : vector<4x256xf32>
    %9 = tpu.matmul %8, %7, %cst_7 {dimension_numbers = #tpu.dot_dimension_numbers<[0], [1], [1], [0], [0, 1, 1, 0], [], []>} : vector<50x4xf32>, vector<256x50xf32>, vector<4x256xf32> -> vector<4x256xf32>
    %c0_8 = arith.constant 0 : index
    %c0_9 = arith.constant 0 : index
    %10 = vector.load %arg5[%c0_8, %c0_9] : memref<4x1xf32, #tpu.memory_space<vmem>>, vector<4x1xf32>
    %11 = vector.broadcast %10 : vector<4x1xf32> to vector<4x256xf32>
    %12 = arith.addf %9, %11 : vector<4x256xf32>
    %cst_10 = arith.constant dense<0xFF800000> : vector<256xf32>
    %13 = vector.multi_reduction <maximumf>, %12, %cst_10 [0] : vector<4x256xf32> to vector<256xf32>
    %14 = vector.shape_cast %13 : vector<256xf32> to vector<1x256xf32>
    %15 = vector.broadcast %14 : vector<1x256xf32> to vector<4x256xf32>
    %16 = arith.subf %12, %15 : vector<4x256xf32>
    %17 = math.exp %16 : vector<4x256xf32>
    %cst_11 = arith.constant dense<0.000000e+00> : vector<256xf32>
    %18 = vector.multi_reduction <add>, %17, %cst_11 [0] : vector<4x256xf32> to vector<256xf32>
    %19 = vector.shape_cast %18 : vector<256xf32> to vector<1x256xf32>
    %20 = math.log %19 : vector<1x256xf32>
    %21 = vector.broadcast %20 : vector<1x256xf32> to vector<4x256xf32>
    %22 = arith.subf %16, %21 : vector<4x256xf32>
    %c0_12 = arith.constant 0 : index
    %c0_13 = arith.constant 0 : index
    %23 = vector.load %arg6[%c0_12, %c0_13] : memref<4x256xf32, #tpu.memory_space<vmem>>, vector<4x256xf32>
    tpu.vector_store %arg6[%c0_12, %c0_13], %22 {strides = array<i32>} : memref<4x256xf32, #tpu.memory_space<vmem>>, vector<4x256xf32>,
    return
  }
  func.func @transform_0(%arg0: i32) -> (i32, i32) {
    %c0_i32 = arith.constant 0 : i32
    %c0_i32_0 = arith.constant 0 : i32
    return %arg0, %c0_i32 : i32, i32
  }
  func.func @transform_1(%arg0: i32) -> (i32, i32) {
    %c0_i32 = arith.constant 0 : i32
    %c0_i32_0 = arith.constant 0 : i32
    %c0_i32_1 = arith.constant 0 : i32
    return %c0_i32, %c0_i32_0 : i32, i32
  }
  func.func @transform_2(%arg0: i32) -> (i32, i32) {
    %c0_i32 = arith.constant 0 : i32
    %c0_i32_0 = arith.constant 0 : i32
    %c0_i32_1 = arith.constant 0 : i32
    return %c0_i32, %c0_i32_0 : i32, i32
  }
  func.func @transform_3(%arg0: i32) -> (i32, i32) {
    %c0_i32 = arith.constant 0 : i32
    %c0_i32_0 = arith.constant 0 : i32
    %c0_i32_1 = arith.constant 0 : i32
    return %c0_i32, %c0_i32_0 : i32, i32
  }
  func.func @transform_4(%arg0: i32) -> (i32, i32) {
    %c0_i32 = arith.constant 0 : i32
    %c0_i32_0 = arith.constant 0 : i32
    %c0_i32_1 = arith.constant 0 : i32
    return %c0_i32, %c0_i32_0 : i32, i32
  }
  func.func @transform_5(%arg0: i32) -> (i32, i32) {
    %c0_i32 = arith.constant 0 : i32
    %c0_i32_0 = arith.constant 0 : i32
    return %c0_i32, %arg0 : i32, i32
  }
}

</mosaic_0001>

<bundles_post_ra>
// kernel: actor_forward.1
= control target key start
LH: loop header
LB: loop body
LE: loop exit
PB: predicated region body
PF: predicated region fallthrough
CT: control target
= control target key end

     0   :  { %s967_s0 = inlined_call_operand.vmem [shape: f32[256,32], index: 0, kind: input, shape index: {}]   ;;  %s968_s1 = inlined_call_operand.vmem [shape: bf16[32,50], index: 1, kind: input, shape index: {}]   ;;  %s969_s2 = inlined_call_operand.vmem [shape: f32[1,50], index: 2, kind: input, shape index: {}]   ;;  %s970_s3 = inlined_call_operand.vmem [shape: f32[50,4], index: 3, kind: input, shape index: {}]   ;;  %s971_s4 = inlined_call_operand.vmem [shape: f32[4,1], index: 4, kind: input, shape index: {}]   ;;  %s972_s5 = inlined_call_operand.hbm [shape: f32[4,256], index: 5, kind: output, shape index: {}]  }
   0x1   :  { %v567_v0 = vld [vmem:[%s968_s1 + $0x8] sm:$0xff]  ;;  %v566_v1 = vld [vmem:[%s968_s1] sm:$0xff]  ;;  %v28_v2 = vld [vmem:[%s967_s0 + $0x30] sm:$0xff] }
   0x2   :  { %568 = vmatpush.bf16.msra.mxu1 %v567_v0  ;;  %570 = vmatpush.bf16.msra.mxu3 %v567_v0  ;;  %v29_v3 = vld [vmem:[%s967_s0 + $0x38] sm:$0xff]  ;;  %v44_v4 = vld [vmem:[%s967_s0 + $0xb0] sm:$0xff] }
   0x3   :  { %v45_v5 = vld [vmem:[%s967_s0 + $0xb8] sm:$0xff]  ;;  %569 = vmatpush.bf16.msra.mxu2 %v567_v0  ;;  %145 = vmatpush.bf16.msra.mxu0 %v567_v0 }
   0x4   :  { %10 = vsyncpa [#allocation3], 0  ;;  %v57_v6 = vpack.c.bf16 %v29_v3, %v28_v2  ;;  %v65_v7 = vpack.c.bf16 %v45_v5, %v44_v4  ;;  %vm90_vm0 = vcmask 261120   ;;  %v36_v8 = vld [vmem:[%s967_s0 + $0x70] sm:$0xff]  ;;  %v37_v9 = vld [vmem:[%s967_s0 + $0x78] sm:$0xff]  ;;  %vm305_vm1 = vcmask 408576  }
   0x5   :  { %v61_v10 = vpack.c.bf16 %v37_v9, %v36_v8  ;;  %v22_v11 = vld [vmem:[%s967_s0] sm:$0xff]  ;;  %v23_v12 = vld [vmem:[%s967_s0 + $0x8] sm:$0xff]  ;;  %v24_v20 = vld [vmem:[%s967_s0 + $0x10] sm:$0xff]  ;;  %vm445_vm2 = vcmask 1043456   ;;  %s499_s26 = sshll.u32 %s972_s5, 4  ;;  %s500_s26 = int_to_ptr.hbm [resolvable:$true] %s499_s26 }
   0x6   :  { %571 = vmatpush.bf16.msra.mxu1 %v566_v1  ;;  %573 = vmatpush.bf16.msra.mxu3 %v566_v1  ;;  %v54_v13 = vpack.c.bf16 %v23_v12, %v22_v11  ;;  %v30_v14 = vld [vmem:[%s967_s0 + $0x40] sm:$0xff]  ;;  %v31_v15 = vld [vmem:[%s967_s0 + $0x48] sm:$0xff]  ;;  %v25_v21 = vld [vmem:[%s967_s0 + $0x18] sm:$0xff] }
   0x7   :  { %572 = vmatpush.bf16.msra.mxu2 %v566_v1  ;;  %146 = vmatpush.bf16.msra.mxu0 %v566_v1  ;;  %v46_v16 = vld [vmem:[%s967_s0 + $0xc0] sm:$0xff]  ;;  %v47_v17 = vld [vmem:[%s967_s0 + $0xc8] sm:$0xff]  ;;  %v58_v18 = vpack.c.bf16 %v31_v15, %v30_v14  ;;  %v55_v23 = vpack.c.bf16 %v25_v21, %v24_v20  ;;  %v32_v26 = vld [vmem:[%s967_s0 + $0x50] sm:$0xff] }
   0x8   :  { %v66_v19 = vpack.c.bf16 %v47_v17, %v46_v16  ;;  %v38_v22 = vld [vmem:[%s967_s0 + $0x80] sm:$0xff]  ;;  %v39_v24 = vld [vmem:[%s967_s0 + $0x88] sm:$0xff]  ;;  %v33_v27 = vld [vmem:[%s967_s0 + $0x58] sm:$0xff] }
   0x9   :  { %519 = vmatmul.msk.bf16.vlgmr.msra.gmra.mxu1 %vm90_vm0, %v57_v6  ;;  %527 = vmatmul.msk.bf16.vlgmr.msra.gmra.mxu3 %vm90_vm0, %v65_v7  ;;  %v62_v25 = vpack.c.bf16 %v39_v24, %v38_v22  ;;  %v48_v28 = vld [vmem:[%s967_s0 + $0xd0] sm:$0xff]  ;;  %v49_v29 = vld [vmem:[%s967_s0 + $0xd8] sm:$0xff]  ;;  %v59_v30 = vpack.c.bf16 %v33_v27, %v32_v26  ;;  %v26_v32 = vld [vmem:[%s967_s0 + $0x20] sm:$0xff] }
   0xa   :  { %523 = vmatmul.msk.bf16.vlgmr.msra.gmra.mxu2 %vm90_vm0, %v61_v10  ;;  %516 = vmatmul.msk.bf16.vlgmr.msra.gmra.mxu0 %vm90_vm0, %v54_v13  ;;  %v67_v31 = vpack.c.bf16 %v49_v29, %v48_v28  ;;  %v27_v33 = vld [vmem:[%s967_s0 + $0x28] sm:$0xff]  ;;  %v40_v34 = vld [vmem:[%s967_s0 + $0x90] sm:$0xff]  ;;  %v41_v36 = vld [vmem:[%s967_s0 + $0x98] sm:$0xff] }
   0xb   :  { %v56_v35 = vpack.c.bf16 %v27_v33, %v26_v32  ;;  %v260_v37 = vld [vmem:[%s970_s3] sm:$0xff]  ;;  %v63_v38 = vpack.c.bf16 %v41_v36, %v40_v34  ;;  %v261_v39 = vld [vmem:[%s970_s3 + $0x8] sm:$0xff]  ;;  %v262_v48 = vld [vmem:[%s970_s3 + $0x10] sm:$0xff] }
   0xc   :  { %273 = vxpose.xlu0.b32.start [1/7] (short) (narrow) %v260_v37, 8  ;;  %v34_v40 = vld [vmem:[%s967_s0 + $0x60] sm:$0xff]  ;;  %v35_v41 = vld [vmem:[%s967_s0 + $0x68] sm:$0xff]  ;;  %v263_v50 = vld [vmem:[%s970_s3 + $0x18] sm:$0xff] }
   0xd   :  { %v50_v42 = vld [vmem:[%s967_s0 + $0xe0] sm:$0xff]  ;;  %v51_v43 = vld [vmem:[%s967_s0 + $0xe8] sm:$0xff]  ;;  %v60_v44 = vpack.c.bf16 %v35_v41, %v34_v40  ;;  %v52_v51 = vld [vmem:[%s967_s0 + $0xf0] sm:$0xff] }
   0xe   :  { %v68_v45 = vpack.c.bf16 %v51_v43, %v50_v42  ;;  %v42_v46 = vld [vmem:[%s967_s0 + $0xa0] sm:$0xff]  ;;  %v43_v47 = vld [vmem:[%s967_s0 + $0xa8] sm:$0xff]  ;;  %v53_v52 = vld [vmem:[%s967_s0 + $0xf8] sm:$0xff] }
   0xf   :  { %v64_v49 = vpack.c.bf16 %v43_v47, %v42_v46  ;;  %v69_v53 = vpack.c.bf16 %v53_v52, %v52_v51  ;;  %v264_v54 = vld [vmem:[%s970_s3 + $0x20] sm:$0xff]  ;;  %v265_v55 = vld [vmem:[%s970_s3 + $0x28] sm:$0xff]  ;;  %v266_v56 = vld [vmem:[%s970_s3 + $0x30] sm:$0x3] }
  0x10   :  { %v858_v62 = vld [vmem:[%s969_s2] ss:$0 sm:$0xff] }
  0x14   :  { %274 = vxpose.xlu0.b32.cont [2/7] (short) (narrow) %v261_v39, 8 }
  0x19   :  { %520 = vmatmul.msk.bf16.gmra.mxu1 %vm90_vm0, %v58_v18  ;;  %528 = vmatmul.msk.bf16.gmra.mxu3 %vm90_vm0, %v66_v19 }
  0x1a   :  { %517 = vmatmul.msk.bf16.gmra.mxu0 %vm90_vm0, %v55_v23  ;;  %524 = vmatmul.msk.bf16.gmra.mxu2 %vm90_vm0, %v62_v25 }
  0x1c   :  { %275 = vxpose.xlu0.b32.cont [3/7] (short) (narrow) %v262_v48, 8 }
  0x24   :  { %276 = vxpose.xlu0.b32.cont [4/7] (short) (narrow) %v263_v50, 8 }
  0x29   :  { %521 = vmatmul.msk.bf16.gmra.mxu1 %vm90_vm0, %v59_v30  ;;  %529 = vmatmul.msk.bf16.gmra.mxu3 %vm90_vm0, %v67_v31 }
  0x2a   :  { %518 = vmatmul.msk.bf16.gmra.mxu0 %vm90_vm0, %v56_v35  ;;  %525 = vmatmul.msk.bf16.gmra.mxu2 %vm90_vm0, %v63_v38 }
  0x2c   :  { %277 = vxpose.xlu0.b32.cont [5/7] (short) (narrow) %v264_v54, 8 }
  0x34   :  { %278 = vxpose.xlu0.b32.cont [6/7] (short) (narrow) %v265_v55, 8 }
  0x39   :  { %522 = vmatmul.msk.bf16.gmra.mxu1 %vm90_vm0, %v60_v44  ;;  %530 = vmatmul.msk.bf16.gmra.mxu3 %vm90_vm0, %v68_v45 }
  0x3a   :  { %526 = vmatmul.msk.bf16.gmra.mxu2 %vm90_vm0, %v64_v49 }
  0x3c   :  { %279 = vxpose.xlu0.b32.end [7/7] (short) (narrow) %v266_v56, 8 }
  0x49   :  { %531 = vmatmul.msk.bf16.gmra.mxu3 %vm90_vm0, %v69_v53 }
  0x86   :  { %v849_v57 = vpop.f32.mrf.mxu1 }
  0x87   :  { %v867_v8 = vpop.f32.mrf.mxu0  ;;  %v164_v40 = vadd.f32 %v858_v62, %v849_v57  ;;  %v267_v57 = vld [vmem:[%s971_s4] sm:$0xf]  ;;  %s679_s4 = smov [#allocation2]  }
  0x88   :  { %s497_s23 = sshll.u32 %s679_s4, 4  ;;  %s498_s23 = int_to_ptr.vmem [resolvable:$true] %s497_s23 }
  0x8c   :  { %v851_v58 = vpop.f32.mrf.mxu3 }
  0x8d   :  { %v183_v60 = vpop.f32.mrf.mxu2 }
  0x8e   :  { %v165_v59 = vpop.f32.mrf.mxu1  ;;  %v184_v2 = vadd.f32 %v858_v62, %v183_v60  ;;  %v678_v60 = vmov 0  }
  0x8f   :  { %v872_v12 = vpop.f32.mrf.mxu0  ;;  %v166_v35 = vadd.f32 %v858_v62, %v165_v59  ;;  %577 = vset.pattern.permute.xlu1 %v678_v60 }
  0x90   :  { %270 = vperm.xlu1 %577, %v267_v57  }
  0x94   :  { %v853_v61 = vpop.f32.mrf.mxu3 }
  0x95   :  { %v185_v0 = vpop.f32.mrf.mxu2 }
  0x96   :  { %v168_v63 = vpop.f32.mrf.mxu1  ;;  %v186_v1 = vadd.f32 %v858_v62, %v185_v0 }
  0x97   :  { %v874_v15 = vpop.f32.mrf.mxu0  ;;  %v169_v33 = vadd.f32 %v858_v62, %v168_v63 }
  0x98   :  { %580 = vtanh.f32 %v186_v1  ;;  %v154_v56 = vadd.f32 %v858_v62, %v874_v15 }
  0x99   :  { %582 = vtanh.f32 %v184_v2 }
  0x9c   :  { %v862_v3 = vpop.f32.mrf.mxu3 }
  0x9d   :  { %v879_v23 = vpop.f32.mrf.mxu2 }
  0x9e   :  { %v170_v4 = vpop.f32.mrf.mxu1  ;;  %v581_v5 = vpop.eup %580 }
  0x9f   :  { %532 = vmatpush.xpose.msk.msrb.mxu1 %vm305_vm1, %v581_v5  ;;  %v583_v6 = vpop.eup %582  ;;  %v155_v21 = vpop.f32.mrf.mxu0  ;;  %v171_v29 = vadd.f32 %v858_v62, %v170_v4  ;;  %v151_v5 = vadd.f32 %v858_v62, %v872_v12  ;;  %v206_v12 = vadd.f32 %v858_v62, %v853_v61 }
  0xa0   :  { %v156_v50 = vadd.f32 %v858_v62, %v155_v21 }
  0xa3   :  { %533 = vmatpush.xpose.msk.msrb.mxu1 %vm305_vm1, %v583_v6  ;;  %578 = vset.pattern.permute.xlu0 %v678_v60 }
  0xa4   :  { %v865_v7 = vpop.f32.mrf.mxu3 }
  0xa5   :  { %v886_v31 = vpop.f32.mrf.mxu2  ;;  %v211_v1 = vadd.f32 %v858_v62, %v865_v7  ;;  %v149_v7 = vadd.f32 %v858_v62, %v867_v8 }
  0xa6   :  { %v173_v9 = vpop.f32.mrf.mxu1 }
  0xa7   :  { %v174_v25 = vadd.f32 %v858_v62, %v173_v9  ;;  %v158_v30 = vpop.f32.mrf.mxu0  ;;  %v209_v9 = vadd.f32 %v858_v62, %v862_v3 }
  0xa8   :  { %v159_v46 = vadd.f32 %v858_v62, %v158_v30 }
  0xac   :  { %v870_v10 = vpop.f32.mrf.mxu3 }
  0xad   :  { %v896_v41 = vpop.f32.mrf.mxu2  ;;  %v214_v59 = vadd.f32 %v858_v62, %v870_v10 }
  0xae   :  { %v175_v11 = vpop.f32.mrf.mxu1 }
  0xaf   :  { %v176_v20 = vadd.f32 %v858_v62, %v175_v11  ;;  %v160_v39 = vpop.f32.mrf.mxu0 }
  0xb0   :  { %v161_v42 = vadd.f32 %v858_v62, %v160_v39 }
  0xb4   :  { %v215_v13 = vpop.f32.mrf.mxu3 }
  0xb5   :  { %v216_v52 = vadd.f32 %v858_v62, %v215_v13  ;;  %v195_v54 = vpop.f32.mrf.mxu2 }
  0xb6   :  { %v178_v14 = vpop.f32.mrf.mxu1 }
  0xb7   :  { %v179_v18 = vadd.f32 %v858_v62, %v178_v14  ;;  %v204_v14 = vadd.f32 %v858_v62, %v851_v58 }
  0xbc   :  { %v218_v16 = vpop.f32.mrf.mxu3 }
  0xbd   :  { %v219_v48 = vadd.f32 %v858_v62, %v218_v16  ;;  %v198_v6 = vpop.f32.mrf.mxu2 }
  0xbe   :  { %v180_v17 = vpop.f32.mrf.mxu1 }
  0xbf   :  { %v181_v19 = vadd.f32 %v858_v62, %v180_v17  ;;  %v289_v17 = vpop.trf.xlu0 }
  0xc1   :  { %584 = vtanh.f32 %v181_v19  ;;  %v199_v19 = vadd.f32 %v858_v62, %v198_v6 }
  0xc2   :  { %586 = vtanh.f32 %v179_v18 }
  0xc3   :  { %588 = vtanh.f32 %v176_v20  ;;  %v196_v20 = vadd.f32 %v858_v62, %v195_v54 }
  0xc4   :  { %v220_v22 = vpop.f32.mrf.mxu3  ;;  %590 = vtanh.f32 %v174_v25  ;;  %v191_v25 = vadd.f32 %v858_v62, %v886_v31 }
  0xc5   :  { %592 = vtanh.f32 %v171_v29  ;;  %v221_v44 = vadd.f32 %v858_v62, %v220_v22  ;;  %v200_v15 = vpop.f32.mrf.mxu2  ;;  %v194_v22 = vadd.f32 %v858_v62, %v896_v41 }
  0xc6   :  { %594 = vtanh.f32 %v169_v33  ;;  %v201_v61 = vadd.f32 %v858_v62, %v200_v15 }
  0xc7   :  { %v585_v24 = vpop.eup %584 }
  0xc8   :  { %534 = vmatpush.xpose.msk.msrb.mxu1 %vm305_vm1, %v585_v24  ;;  %v587_v26 = vpop.eup %586 }
  0xc9   :  { %v589_v28 = vpop.eup %588 }
  0xca   :  { %v591_v32 = vpop.eup %590 }
  0xcb   :  { %v593_v37 = vpop.eup %592 }
  0xcc   :  { %v223_v27 = vpop.f32.mrf.mxu3  ;;  %535 = vmatpush.xpose.msk.msrb.mxu1 %vm305_vm1, %v587_v26  ;;  %v595_v43 = vpop.eup %594 }
  0xcd   :  { %v224_v38 = vadd.f32 %v858_v62, %v223_v27  ;;  %v189_v27 = vadd.f32 %v858_v62, %v879_v23 }
  0xd0   :  { %536 = vmatpush.xpose.msk.msrb.mxu1 %vm305_vm1, %v589_v28 }
  0xd4   :  { %v225_v34 = vpop.f32.mrf.mxu3  ;;  %537 = vmatpush.xpose.msk.msrb.mxu1 %vm305_vm1, %v591_v32 }
  0xd5   :  { %v226_v36 = vadd.f32 %v858_v62, %v225_v34 }
  0xd7   :  { %596 = vtanh.f32 %v226_v36 }
  0xd8   :  { %538 = vmatpush.xpose.msk.msrb.mxu1 %vm305_vm1, %v593_v37  ;;  %598 = vtanh.f32 %v166_v35 }
  0xd9   :  { %600 = vtanh.f32 %v224_v38 }
  0xda   :  { %602 = vtanh.f32 %v164_v40 }
  0xdb   :  { %604 = vtanh.f32 %v161_v42 }
  0xdc   :  { %539 = vmatpush.xpose.msk.msrb.mxu1 %vm305_vm1, %v595_v43  ;;  %606 = vtanh.f32 %v221_v44 }
  0xdd   :  { %v597_v45 = vpop.eup %596  ;;  %608 = vtanh.f32 %v159_v46 }
  0xde   :  { %549 = vmatpush.xpose.msk.msrb.mxu2 %vm305_vm1, %v597_v45  ;;  %v599_v47 = vpop.eup %598  ;;  %610 = vtanh.f32 %v219_v48 }
  0xdf   :  { %v601_v49 = vpop.eup %600  ;;  %612 = vtanh.f32 %v156_v50 }
  0xe0   :  { %540 = vmatpush.xpose.msk.msrb.mxu1 %vm305_vm1, %v599_v47  ;;  %v603_v51 = vpop.eup %602  ;;  %614 = vtanh.f32 %v216_v52 }
  0xe1   :  { %v605_v53 = vpop.eup %604  ;;  %616 = vtanh.f32 %v154_v56 }
  0xe2   :  { %550 = vmatpush.xpose.msk.msrb.mxu2 %vm305_vm1, %v601_v49  ;;  %v607_v55 = vpop.eup %606  ;;  %618 = vtanh.f32 %v214_v59 }
  0xe3   :  { %v609_v63 = vpop.eup %608  ;;  %620 = vtanh.f32 %v211_v1 }
  0xe4   :  { %541 = vmatpush.xpose.msk.msrb.mxu1 %vm305_vm1, %v603_v51  ;;  %v611_v0 = vpop.eup %610  ;;  %622 = vtanh.f32 %v151_v5 }
  0xe5   :  { %v613_v2 = vpop.eup %612  ;;  %624 = vtanh.f32 %v209_v9 }
  0xe6   :  { %551 = vmatpush.xpose.msk.msrb.mxu2 %vm305_vm1, %v607_v55  ;;  %v615_v4 = vpop.eup %614  ;;  %626 = vtanh.f32 %v149_v7 }
  0xe7   :  { %v617_v10 = vpop.eup %616  ;;  %628 = vtanh.f32 %v206_v12 }
  0xe8   :  { %542 = vmatpush.xpose.msk.msrb.mxu1 %vm305_vm1, %v605_v53  ;;  %v619_v11 = vpop.eup %618  ;;  %630 = vtanh.f32 %v204_v14 }
  0xe9   :  { %v621_v13 = vpop.eup %620  ;;  %632 = vtanh.f32 %v201_v61 }
  0xea   :  { %552 = vmatpush.xpose.msk.msrb.mxu2 %vm305_vm1, %v611_v0  ;;  %v623_v3 = vpop.eup %622  ;;  %634 = vtanh.f32 %v199_v19 }
  0xeb   :  { %v625_v8 = vpop.eup %624  ;;  %636 = vtanh.f32 %v196_v20 }
  0xec   :  { %543 = vmatpush.xpose.msk.msrb.mxu1 %vm305_vm1, %v609_v63  ;;  %v627_v16 = vpop.eup %626  ;;  %638 = vtanh.f32 %v194_v22 }
  0xed   :  { %v629_v18 = vpop.eup %628  ;;  %640 = vtanh.f32 %v191_v25 }
  0xee   :  { %553 = vmatpush.xpose.msk.msrb.mxu2 %vm305_vm1, %v615_v4  ;;  %v631_v58 = vpop.eup %630  ;;  %642 = vtanh.f32 %v189_v27 }
  0xef   :  { %v633_v21 = vpop.eup %632 }
  0xf0   :  { %544 = vmatpush.xpose.msk.msrb.mxu1 %vm305_vm1, %v613_v2  ;;  %v635_v24 = vpop.eup %634 }
  0xf1   :  { %v637_v26 = vpop.eup %636 }
  0xf2   :  { %554 = vmatpush.xpose.msk.msrb.mxu2 %vm305_vm1, %v619_v11  ;;  %v639_v28 = vpop.eup %638 }
  0xf3   :  { %v641_v29 = vpop.eup %640 }
  0xf4   :  { %545 = vmatpush.xpose.msk.msrb.mxu1 %vm305_vm1, %v617_v10  ;;  %v643_v30 = vpop.eup %642 }
  0xf6   :  { %555 = vmatpush.xpose.msk.msrb.mxu2 %vm305_vm1, %v621_v13 }
  0xf8   :  { %546 = vmatpush.xpose.msk.msrb.mxu1 %vm305_vm1, %v623_v3 }
  0xfa   :  { %556 = vmatpush.xpose.msk.msrb.mxu2 %vm305_vm1, %v625_v8 }
  0xfc   :  { %547 = vmatpush.xpose.msk.msrb.mxu1 %vm305_vm1, %v627_v16 }
  0xfe   :  { %557 = vmatpush.xpose.msk.msrb.mxu2 %vm305_vm1, %v629_v18 }
  0xff   :  { %548 = vmatmul.msk.f32.vlgmr.msrb.gmra.mxu1 %vm305_vm1, %v289_v17 }
 0x102   :  { %558 = vmatpush.xpose.msk.msrb.mxu2 %vm305_vm1, %v631_v58  ;;  %v271_v31 = vpop.permute.xlu1 %270 }
 0x106   :  { %559 = vmatpush.xpose.msk.msrb.mxu2 %vm305_vm1, %v633_v21 }
 0x10a   :  { %560 = vmatpush.xpose.msk.msrb.mxu2 %vm305_vm1, %v635_v24 }
 0x10e   :  { %561 = vmatpush.xpose.msk.msrb.mxu2 %vm305_vm1, %v637_v26 }
 0x112   :  { %562 = vmatpush.xpose.msk.msrb.mxu2 %vm305_vm1, %v639_v28 }
 0x116   :  { %563 = vmatpush.xpose.msk.msrb.mxu2 %vm305_vm1, %v641_v29 }
 0x11a   :  { %564 = vmatpush.xpose.msk.msrb.mxu2 %vm305_vm1, %v643_v30 }
 0x11d   :  { %565 = vmatmul.msk.f32.vlgmr.msrb.gmra.mxu2 %vm305_vm1, %v289_v17 }
 0x17c   :  { %v422_v32 = vpop.f32.mrf.mxu1 }
 0x17d   :  { %v423_v33 = vadd.f32 %v422_v32, %v271_v31 }
 0x17f   :  { %v446_v34 = vsel %vm445_vm2, %v423_v33, -inf }
 0x180   :  { %v447_v62 = vrot.slane %v446_v34, 4 }
 0x182   :  { %v448_v23 = vmax.f32 %v446_v34, %v447_v62 }
 0x184   :  { %v449_v35 = vrot.slane %v448_v23, 2 }
 0x186   :  { %v450_v36 = vmax.f32 %v448_v23, %v449_v35 }
 0x188   :  { %v451_v37 = vrot.slane %v450_v36, 1 }
 0x18a   :  { %v452_v38 = vmax.f32 %v450_v36, %v451_v37 }
 0x18c   :  { %v460_v39 = vsub.f32 %v423_v33, %v452_v38 }
 0x18e   :  { %v462_v40 = vmul.f32 1.442695, %v460_v39 }
 0x190   :  { %644 = vpow2.f32 %v462_v40 }
 0x196   :  { %v645_v46 = vpop.eup %644 }
 0x197   :  { %v466_v49 = vsel %vm445_vm2, %v645_v46, 0.0 }
 0x198   :  { %v467_v51 = vrot.slane %v466_v49, 4 }
 0x19a   :  { %v468_v54 = vadd.f32 %v467_v51, %v466_v49 }
 0x19c   :  { %v469_v56 = vrot.slane %v468_v54, 2 }
 0x19e   :  { %v470_v59 = vadd.f32 %v469_v56, %v468_v54 }
 0x1a0   :  { %v442_v41 = vpop.f32.mrf.mxu2  ;;  %v471_v0 = vrot.slane %v470_v59, 1 }
 0x1a1   :  { %v443_v42 = vadd.f32 %v442_v41, %v271_v31 }
 0x1a2   :  { %v472_v4 = vadd.f32 %v471_v0, %v470_v59 }
 0x1a3   :  { %v453_v43 = vsel %vm445_vm2, %v443_v42, -inf }
 0x1a4   :  { %v454_v44 = vrot.slane %v453_v43, 4 }
 0x1a6   :  { %v455_v45 = vmax.f32 %v453_v43, %v454_v44 }
 0x1a8   :  { %v456_v47 = vrot.slane %v455_v45, 2 }
 0x1aa   :  { %v457_v48 = vmax.f32 %v455_v45, %v456_v47 }
 0x1ac   :  { %v458_v50 = vrot.slane %v457_v48, 1 }
 0x1ae   :  { %v459_v52 = vmax.f32 %v457_v48, %v458_v50 }
 0x1b0   :  { %v461_v53 = vsub.f32 %v443_v42, %v459_v52 }
 0x1b2   :  { %v464_v55 = vmul.f32 1.442695, %v461_v53 }
 0x1b4   :  { %646 = vpow2.f32 %v464_v55 }
 0x1b5   :  { %648 = vlog2.f32 %v472_v4 }
 0x1ba   :  { %v647_v57 = vpop.eup %646 }
 0x1bb   :  { %v473_v60 = vsel %vm445_vm2, %v647_v57, 0.0  ;;  %v649_v10 = vpop.eup %648 }
 0x1bc   :  { %v474_v63 = vrot.slane %v473_v60, 4  ;;  %v481_v7 = vmul.f32 0.6931472, %v649_v10 }
 0x1be   :  { %v475_v1 = vadd.f32 %v474_v63, %v473_v60  ;;  %v484_v3 = vsub.f32 %v460_v39, %v481_v7 }
 0x1c0   :  { %v476_v2 = vrot.slane %v475_v1, 2 }
 0x1c2   :  { %v477_v5 = vadd.f32 %v476_v2, %v475_v1 }
 0x1c4   :  { %v478_v6 = vrot.slane %v477_v5, 1 }
 0x1c6   :  { %v479_v9 = vadd.f32 %v478_v6, %v477_v5 }
 0x1c8   :  { %650 = vlog2.f32 %v479_v9 }
 0x1ce   :  { %v651_v11 = vpop.eup %650 }
 0x1cf   :  { %v483_v12 = vmul.f32 0.6931472, %v651_v11 }
 0x1d1   :  { %v485_v13 = vsub.f32 %v461_v53, %v483_v12 }
 0x1d3   :  { %v488_v14 = vrot.slane %v485_v13, 4 }
 0x1d5   :  { %v489_v15 = vsel %vm445_vm2, %v484_v3, %v488_v14 }
 0x1d6   :  { %491 = vst [vmem:[#allocation2] sm:$0xff] %v489_v15 }
 0x1d7   :  { %502 = dma.vmem_to_hbm [thread:$0]  %s498_s23, 128, %s500_s26, [#allocation3]  }
 0x1d8   :  { %676 = dma.done.wait [#allocation3], 128  }
 0x1d9   :  { %677 = vsyncadd [#allocation3], 4294967168 }
 0x1da   :  { %507 = vsyncpa [#allocation3], 1 }

</bundles_post_ra>
